<compile_context>
chip_gen: v5e
topology: v5e:2x2
jax: 0.10.0
libtpu: 0.0.40
codegen_flags: <defaults>
</compile_context>

<pallas_src>
import math

import jax
import jax.numpy as jnp
import numpy as np
from jax.experimental import pallas as pl
from jax.experimental.pallas import tpu as pltpu


# ----------------------------------------------------------------------------
# Kernel: one (or two) skinny MXU matmuls per block, single wide store.
# ----------------------------------------------------------------------------
def _cat_add_kernel(x1_ref, x2_ref, m1_ref, m2_ref, o_ref):
    # x1_ref: (TB, g)        m1_ref: (g, out_wg)       -- resident weights
    # x2_ref: (TB, g*W2)     m2_ref: (g*W2, out_wg)    -- resident weights
    # o_ref : (TB, out_wg)   out_wg = g * 4 * (1 + W2), multiple of 128 lanes
    acc = jnp.dot(x1_ref[...], m1_ref[...],
                  preferred_element_type=jnp.float32,
                  precision=jax.lax.Precision.HIGHEST)
    acc = acc + jnp.dot(x2_ref[...], m2_ref[...],
                        preferred_element_type=jnp.float32,
                        precision=jax.lax.Precision.HIGHEST)
    o_ref[...] = acc.astype(o_ref.dtype)


# ----------------------------------------------------------------------------
# Constant replication/broadcast matrices (built once per shape, tiny).
# ----------------------------------------------------------------------------
def _build_weights(g, w2, dtype):
    seg = 1 + w2
    out_w = 4 * seg
    out_wg = g * out_w
    m1 = np.zeros((g, out_wg), np.float32)
    m2 = np.zeros((g * w2, out_wg), np.float32)
    for j in range(g):
        for r in range(4):
            base = j * out_w + r * seg
            m1[j, base] = 2.0                       # v2[...,0] = x1 + x1
            m1[j, base + 1: base + seg] = 1.0       # v2[...,c] = x1 + x2[c-1]
            for c in range(w2):
                m2[j * w2 + c, base + 1 + c] = 1.0
    return jnp.asarray(m1, dtype), jnp.asarray(m2, dtype)


def _pick_tb(bg, out_wg, itemsize, sub, target_bytes=6 << 20):
    """Rows per grid step: ~6 MiB of output, sublane-aligned, >=2 grid steps
    when possible (v7x megacore + DMA overlap), prefer a divisor of bg."""
    if bg <= sub:
        return bg
    tb = max(sub, (target_bytes // max(1, out_wg * itemsize)) // sub * sub)
    half = (bg // 2) // sub * sub
    if half >= sub:
        tb = min(tb, half)            # keep at least 2 grid steps
    tb = min(tb, bg // sub * sub)
    for cand in range(tb, sub - 1, -sub):
        if bg % cand == 0:            # avoid a partial trailing block
            return cand
    return tb


# ----------------------------------------------------------------------------
# Wrapper
# ----------------------------------------------------------------------------
def model_forward(x1, x2):
    """Pallas equivalent of Model.forward (returns the flattened v7)."""
    B, W1 = x1.shape
    B2, W2 = x2.shape
    assert B == B2, "batch dims must match for cat along dim=1"
    assert W1 == 1, "x1 + v6 only broadcasts when x1 has feature width 1"
    assert W2 >= 1

    dtype = x1.dtype
    itemsize = jnp.dtype(dtype).itemsize
    sub = {4: 8, 2: 16, 1: 32}.get(itemsize, 8)   # dtype-aware sublane quantum
    seg = 1 + W2
    out_w = 4 * seg

    # Lane-dense grouping: out_wg = g*out_w is always a multiple of 128.
    g = 128 // math.gcd(out_w, 128)
    while g < 8:                       # keep matmul K dims sublane-aligned
        g *= 2
    while g > 1 and (g * seg) * (g * out_w) * itemsize > (4 << 20):
        g //= 2                        # cap constant-weight VMEM footprint
    out_wg = g * out_w

    # Pad batch to a multiple of g (padded rows are zeros, sliced off below).
    b_pad = ((B + g - 1) // g) * g
    if b_pad != B:
        x1 = jnp.pad(x1, ((0, b_pad - B), (0, 0)))
        x2 = jnp.pad(x2, ((0, b_pad - B), (0, 0)))
    bg = b_pad // g

    # Free row-major regroupings (flat order preserved end-to-end).
    x1g = x1.reshape(bg, g * W1)
    x2g = x2.reshape(bg, g * W2)
    m1, m2 = _build_weights(g, W2, dtype)

    tb = _pick_tb(bg, out_wg, itemsize, sub)
    grid = (pl.cdiv(bg, tb),)

    block_bytes = tb * (out_wg + g * W1 + g * W2) * itemsize
    const_bytes = (g * W1 + g * W2) * out_wg * itemsize
    vmem_limit = int(min(48 << 20,
                         max(16 << 20, 2 * block_bytes + 2 * const_bytes + (2 << 20))))

    out = pl.pallas_call(
        _cat_add_kernel,
        out_shape=jax.ShapeDtypeStruct((bg, out_wg), dtype),
        grid=grid,
        in_specs=[
            pl.BlockSpec((tb, g * W1), lambda i: (i, 0)),
            pl.BlockSpec((tb, g * W2), lambda i: (i, 0)),
            pl.BlockSpec((g * W1, out_wg), lambda i: (0, 0)),   # resident weight
            pl.BlockSpec((g * W2, out_wg), lambda i: (0, 0)),   # resident weight
        ],
        out_specs=pl.BlockSpec((tb, out_wg), lambda i: (i, 0)),
        compiler_params=pltpu.CompilerParams(
            dimension_semantics=("parallel",),
            vmem_limit_bytes=vmem_limit,
        ),
    )(x1g, x2g, m1, m2)

    # v7 = v2.view(-1): row-major flat order of (bg, g*out_w) == (b_pad, out_w).
    flat = out.reshape(-1)
    if b_pad != B:
        flat = flat[: B * out_w]
    return flat


def model_forward_ref(x1, x2):
    """Pure-JAX reference mirroring the PyTorch forward."""
    v1 = jnp.concatenate((x1, x2), axis=1)
    v3 = jnp.concatenate((x1, x2), axis=1)
    v4 = jnp.concatenate((v1, v3), axis=1)
    v5 = jnp.concatenate((v4, v3), axis=1)
    v6 = jnp.concatenate((v1, v5), axis=1)
    v2 = x1 + v6
    return v2.reshape(-1)


def _check(x1, x2, *, tol=1e-5):
    out = jax.block_until_ready(model_forward(x1, x2))
    ref = model_forward_ref(x1, x2)
    assert out.shape == ref.shape, (out.shape, ref.shape)
    assert out.dtype == ref.dtype, (out.dtype, ref.dtype)
    assert jnp.allclose(out.astype(jnp.float32), ref.astype(jnp.float32),
                        atol=tol, rtol=tol), "mismatch vs reference"


if __name__ == "__main__":
    key = jax.random.PRNGKey(0)
    ks = jax.random.split(key, 12)

    # Spec-like shapes (x2 width 3; x1 width 1 so the broadcast-add is defined).
    _check(jax.random.normal(ks[0], (64, 1), jnp.float32),
           jax.random.normal(ks[1], (64, 3), jnp.float32))

    # Multi-step grid (2 parallel steps), grouped lane-dense output.
    _check(jax.random.normal(ks[2], (256, 1), jnp.float32),
           jax.random.normal(ks[3], (256, 7), jnp.float32))

    # Segment already 128-wide; still grouped to g=8 for wider stores.
    _check(jax.random.normal(ks[4], (128, 1), jnp.float32),
           jax.random.normal(ks[5], (128, 31), jnp.float32))

    # out_w (12) does not divide 128: lcm grouping + batch zero-pad + final slice.
    _check(jax.random.normal(ks[6], (40, 1), jnp.float32),
           jax.random.normal(ks[7], (40, 2), jnp.float32))

    # Partial trailing grid block (masked writeback, still correct).
    _check(jax.random.normal(ks[8], (80, 1), jnp.float32),
           jax.random.normal(ks[9], (80, 7), jnp.float32))

    # bf16 inputs: MXU consumes bf16 natively, f32 accumulate, cast on store.
    _check(jax.random.normal(ks[10], (64, 1), jnp.bfloat16),
           jax.random.normal(ks[11], (64, 7), jnp.bfloat16), tol=2e-2)

    print("KERNEL_OK")
</pallas_src>

<mosaic_0001>
module attributes {stable_mosaic.version = 11 : i64} {
  func.func @_cat_add_kernel(%arg0: i32, %arg1: memref<8x8xf32, #tpu.memory_space<vmem>>, %arg2: memref<8x24xf32, #tpu.memory_space<vmem>>, %arg3: memref<8x128xf32, #tpu.memory_space<vmem>>, %arg4: memref<24x128xf32, #tpu.memory_space<vmem>>, %arg5: memref<8x128xf32, #tpu.memory_space<vmem>>) attributes {dimension_semantics = [#tpu.dimension_semantics<parallel>], iteration_bounds = array<i64: 1>, scalar_prefetch = 0 : i64, scratch_operands = 0 : i64, tpu.core_type = #tpu.core_type<tc>, window_params = [{transform_indices = @transform_0, window_bounds = array<i64: 8, 8>}, {transform_indices = @transform_1, window_bounds = array<i64: 8, 24>}, {pipeline_mode = #tpu.pipeline_mode<synchronous>, transform_indices = @transform_2, window_bounds = array<i64: 8, 128>}, {pipeline_mode = #tpu.pipeline_mode<synchronous>, transform_indices = @transform_3, window_bounds = array<i64: 24, 128>}, {transform_indices = @transform_4, window_bounds = array<i64: 8, 128>}]} {
    %c0 = arith.constant 0 : index
    %c0_0 = arith.constant 0 : index
    %0 = vector.load %arg1[%c0, %c0_0] : memref<8x8xf32, #tpu.memory_space<vmem>>, vector<8x8xf32>
    %c0_1 = arith.constant 0 : index
    %c0_2 = arith.constant 0 : index
    %1 = vector.load %arg3[%c0_1, %c0_2] : memref<8x128xf32, #tpu.memory_space<vmem>>, vector<8x128xf32>
    %cst = arith.constant dense<0.000000e+00> : vector<8x128xf32>
    %2 = tpu.matmul %0, %1, %cst {dimension_numbers = #tpu.dot_dimension_numbers<[1], [0], [0], [1], [0, 0, 1, 1], [], []>, precision = #tpu.contract_precision<fp32>} : vector<8x8xf32>, vector<8x128xf32>, vector<8x128xf32> -> vector<8x128xf32>
    %c0_3 = arith.constant 0 : index
    %c0_4 = arith.constant 0 : index
    %3 = vector.load %arg2[%c0_3, %c0_4] : memref<8x24xf32, #tpu.memory_space<vmem>>, vector<8x24xf32>
    %c0_5 = arith.constant 0 : index
    %c0_6 = arith.constant 0 : index
    %4 = vector.load %arg4[%c0_5, %c0_6] : memref<24x128xf32, #tpu.memory_space<vmem>>, vector<24x128xf32>
    %cst_7 = arith.constant dense<0.000000e+00> : vector<8x128xf32>
    %5 = tpu.matmul %3, %4, %cst_7 {dimension_numbers = #tpu.dot_dimension_numbers<[1], [0], [0], [1], [0, 0, 1, 1], [], []>, precision = #tpu.contract_precision<fp32>} : vector<8x24xf32>, vector<24x128xf32>, vector<8x128xf32> -> vector<8x128xf32>
    %6 = arith.addf %2, %5 : vector<8x128xf32>
    %c0_8 = arith.constant 0 : index
    %c0_9 = arith.constant 0 : index
    %7 = vector.load %arg5[%c0_8, %c0_9] : memref<8x128xf32, #tpu.memory_space<vmem>>, vector<8x128xf32>
    tpu.vector_store %arg5[%c0_8, %c0_9], %6 {strides = array<i32>} : memref<8x128xf32, #tpu.memory_space<vmem>>, vector<8x128xf32>,
    return
  }
  func.func @transform_0(%arg0: i32) -> (i32, i32) {
    %c0_i32 = arith.constant 0 : i32
    %c0_i32_0 = arith.constant 0 : i32
    return %arg0, %c0_i32 : i32, i32
  }
  func.func @transform_1(%arg0: i32) -> (i32, i32) {
    %c0_i32 = arith.constant 0 : i32
    %c0_i32_0 = arith.constant 0 : i32
    return %arg0, %c0_i32 : i32, i32
  }
  func.func @transform_2(%arg0: i32) -> (i32, i32) {
    %c0_i32 = arith.constant 0 : i32
    %c0_i32_0 = arith.constant 0 : i32
    %c0_i32_1 = arith.constant 0 : i32
    return %c0_i32, %c0_i32_0 : i32, i32
  }
  func.func @transform_3(%arg0: i32) -> (i32, i32) {
    %c0_i32 = arith.constant 0 : i32
    %c0_i32_0 = arith.constant 0 : i32
    %c0_i32_1 = arith.constant 0 : i32
    return %c0_i32, %c0_i32_0 : i32, i32
  }
  func.func @transform_4(%arg0: i32) -> (i32, i32) {
    %c0_i32 = arith.constant 0 : i32
    %c0_i32_0 = arith.constant 0 : i32
    return %arg0, %c0_i32 : i32, i32
  }
}

</mosaic_0001>

<bundles_post_ra>
// kernel: tpu_custom_call.1
= control target key start
LH: loop header
LB: loop body
LE: loop exit
PB: predicated region body
PF: predicated region fallthrough
CT: control target
= control target key end

     0   :  { %9 = vsyncpa [#allocation3], 0  ;;  %s609_s0 = inlined_call_operand.hbm [shape: f32[8,8], index: 0, kind: input, shape index: {}]   ;;  %s610_s1 = inlined_call_operand.hbm [shape: f32[8,24], index: 1, kind: input, shape index: {}]   ;;  %s611_s2 = inlined_call_operand.hbm [shape: f32[8,128], index: 2, kind: input, shape index: {}]   ;;  %s612_s3 = inlined_call_operand.hbm [shape: f32[24,128], index: 3, kind: input, shape index: {}]   ;;  %s613_s4 = inlined_call_operand.hbm [shape: f32[8,128], index: 4, kind: output, shape index: {}]  }
   0x1   :  { %10 = vsyncpa [#allocation6], 0 }
   0x2   :  { %11 = vsyncpa [#allocation9], 0  ;;  %s29_s17 = sshll.u32 %s610_s1, 4  ;;  %s30_s17 = int_to_ptr.hbm [resolvable:$true] %s29_s17 }
   0x3   :  { %12 = vsyncpa [#allocation4], 0  ;;  %s562_s18 = smov [#allocation5]   ;;  %s18_s22 = sshll.u32 %s609_s0, 4  ;;  %s19_s22 = int_to_ptr.hbm [resolvable:$true] %s18_s22 }
   0x4   :  { %s31_s19 = sshll.u32 %s562_s18, 4  ;;  %s563_s23 = smov [#allocation2]   ;;  %s32_s19 = int_to_ptr.vmem [resolvable:$true] %s31_s19 }
   0x5   :  { %34 = dma.hbm_to_vmem [thread:$0]  %s30_s17, 128, %s32_s19, [#allocation6]  }
   0x6   :  { %s20_s24 = sshll.u32 %s563_s23, 4  ;;  %s40_s27 = sshll.u32 %s611_s2, 4  ;;  %s21_s24 = int_to_ptr.vmem [resolvable:$true] %s20_s24  ;;  %s41_s27 = int_to_ptr.hbm [resolvable:$true] %s40_s27 }
   0x7   :  { %23 = dma.hbm_to_vmem [thread:$0]  %s19_s22, 128, %s21_s24, [#allocation3]  }
   0x8   :  { %s50_s29 = sshll.u32 %s612_s3, 4  ;;  %s564_s30 = smov [#allocation7]   ;;  %s51_s29 = int_to_ptr.hbm [resolvable:$true] %s50_s29 }
   0x9   :  { %s42_s5 = sshll.u32 %s564_s30, 4  ;;  %s565_s0 = smov [#allocation8]   ;;  %s43_s5 = int_to_ptr.vmem [resolvable:$true] %s42_s5 }
   0xa   :  { %45 = dma.hbm_to_vmem [thread:$0]  %s41_s27, 128, %s43_s5, [#allocation6]  }
   0xb   :  { %s52_s6 = sshll.u32 %s565_s0, 4  ;;  %s566_s7 = smov 128   ;;  %s53_s6 = int_to_ptr.vmem [resolvable:$true] %s52_s6 }
   0xc   :  { %s567_s8 = smov 8  }
   0xd   :  { %58 = dma.hbm_to_vmem [thread:$0]  %s51_s29, 384, %s53_s6, [#allocation9], %s566_s7, %s566_s7, %s567_s8  }
   0xe   :  { %554 = dma.done.wait [#allocation3], 128  }
   0xf   :  { %555 = vsyncadd [#allocation3], 4294967168 }
  0x10   :  { %556 = dma.done.wait [#allocation6], 256  }
  0x11   :  { %557 = vsyncadd [#allocation6], 4294967040 }
  0x12   :  { %558 = dma.done.wait [#allocation9], 384  }
  0x13   :  { %559 = vsyncadd [#allocation9], 4294966912  ;;  %vm81_vm0 = vcmask 195584   ;;  %vm257_vm1 = vcmask 64512   ;;  %v80_v0 = vld [vmem:[#allocation8 + $0x10] sm:$0xff]  ;;  %v79_v1 = vld [vmem:[#allocation8 + $0x8] sm:$0xff] }
  0x14   :  { %v78_v2 = vld [vmem:[#allocation8] sm:$0xff]  ;;  %v98_v3 = vand.u32 4294901760, %v80_v0  ;;  %v100_v4 = vand.u32 4294901760, %v79_v1  ;;  %v77_v6 = vld [vmem:[#allocation5] sm:$0xff]  ;;  %v76_v7 = vld [vmem:[#allocation7] sm:$0xff]  ;;  %s568_s2 = smov [#allocation10]  }
  0x15   :  { %v102_v5 = vand.u32 4294901760, %v78_v2  ;;  %v75_v8 = vld [vmem:[#allocation2] sm:$0xff]  ;;  %v83_v9 = vsel %vm81_vm0, %v77_v6, 0  ;;  %v276_v10 = vand.u32 4294901760, %v76_v7  ;;  %s413_s3 = sshll.u32 %s568_s2, 4  ;;  %s415_s11 = sshll.u32 %s613_s4, 4  ;;  %s414_s3 = int_to_ptr.vmem [resolvable:$true] %s413_s3  ;;  %s416_s11 = int_to_ptr.hbm [resolvable:$true] %s415_s11 }
  0x16   :  { %v259_v11 = vsel %vm257_vm1, %v75_v8, 0  ;;  %v127_v12 = vsub.f32 %v80_v0, %v98_v3  ;;  %99 = vmatpush.msra.mxu0 %v98_v3  ;;  %v133_v13 = vsub.f32 %v79_v1, %v100_v4  ;;  %191 = vmatpush.msra.mxu3 %v98_v3  ;;  %v104_v15 = vand.u32 4294901760, %v83_v9 }
  0x17   :  { %v139_v14 = vsub.f32 %v78_v2, %v102_v5  ;;  %v303_v16 = vsub.f32 %v76_v7, %v276_v10  ;;  %v278_v17 = vand.u32 4294901760, %v259_v11 }
  0x18   :  { %164 = vmatpush.msra.mxu2 %v127_v12  ;;  %101 = vmatpush.msra.mxu0 %v100_v4  ;;  %v128_v18 = vand.u32 4294901760, %v127_v12  ;;  %v105_v19 = vsub.f32 %v83_v9, %v104_v15  ;;  %v134_v20 = vand.u32 4294901760, %v133_v13 }
  0x19   :  { %v140_v21 = vand.u32 4294901760, %v139_v14  ;;  %193 = vmatpush.msra.mxu3 %v100_v4  ;;  %v304_v22 = vand.u32 4294901760, %v303_v16  ;;  %v279_v23 = vsub.f32 %v259_v11, %v278_v17 }
  0x1a   :  { %167 = vmatpush.msra.mxu2 %v133_v13  ;;  %v129_v24 = vsub.f32 %v127_v12, %v128_v18  ;;  %103 = vmatpush.msra.mxu0 %v102_v5  ;;  %v135_v25 = vsub.f32 %v133_v13, %v134_v20  ;;  %v106_v26 = vand.u32 4294901760, %v105_v19 }
  0x1b   :  { %v141_v27 = vsub.f32 %v139_v14, %v140_v21  ;;  %195 = vmatpush.msra.mxu3 %v102_v5  ;;  %v305_v28 = vsub.f32 %v303_v16, %v304_v22  ;;  %v280_v29 = vand.u32 4294901760, %v279_v23 }
  0x1c   :  { %219 = vmatpush.msrb.mxu0 %v128_v18  ;;  %v130_v30 = vand.u32 4294901760, %v129_v24  ;;  %170 = vmatpush.msra.mxu2 %v139_v14  ;;  %v136_v31 = vand.u32 4294901760, %v135_v25  ;;  %v107_v32 = vsub.f32 %v105_v19, %v106_v26 }
  0x1d   :  { %199 = vmatmul.f32.vlgmr.msra.gmra.mxu3 %v106_v26  ;;  %173 = vmatmul.f32.vlgmr.msra.gmra.mxu2 %v105_v19  ;;  %v306_v33 = vand.u32 4294901760, %v305_v28  ;;  %v281_v34 = vsub.f32 %v279_v23, %v280_v29  ;;  %v142_v36 = vand.u32 4294901760, %v141_v27 }
  0x1e   :  { %223 = vmatpush.msrb.mxu0 %v134_v20  ;;  %131 = vmatpush.msra.mxu1 %v130_v30  ;;  %v108_v35 = vand.u32 4294901760, %v107_v32 }
  0x1f   :  { %277 = vmatpush.msrb.mxu2 %v276_v10  ;;  %307 = vmatpush.msrb.mxu3 %v306_v33  ;;  %v282_v37 = vand.u32 4294901760, %v281_v34 }
  0x20   :  { %227 = vmatpush.msrb.mxu0 %v140_v21  ;;  %137 = vmatpush.msra.mxu1 %v136_v31 }
  0x21   :  { %109 = vmatmul.f32.vlgmr.msra.gmra.mxu0 %v108_v35  ;;  %379 = vmatpush.msra.mxu2 %v304_v22 }
  0x22   :  { %330 = vmatpush.msra.mxu0 %v303_v16  ;;  %143 = vmatpush.msra.mxu1 %v142_v36 }
  0x23   :  { %401 = vmatpush.msra.mxu3 %v276_v10  ;;  %145 = vmatmul.f32.vlgmr.msra.gmra.mxu1 %v104_v15 }
  0x24   :  { %247 = vmatpush.msrb.mxu1 %v98_v3 }
  0x25   :  { %309 = vmatmul.f32.vlgmr.msrb.gmra.mxu3 %v278_v17  ;;  %283 = vmatmul.f32.vlgmr.msrb.gmra.mxu2 %v282_v37 }
  0x26   :  { %249 = vmatpush.msrb.mxu1 %v100_v4 }
  0x28   :  { %251 = vmatpush.msrb.mxu1 %v102_v5 }
  0x29   :  { %229 = vmatmul.f32.vlgmr.msrb.gmra.mxu0 %v104_v15 }
  0x2a   :  { %353 = vmatpush.msra.mxu1 %v276_v10 }
  0x2b   :  { %253 = vmatmul.f32.vlgmr.msrb.gmra.mxu1 %v104_v15 }
  0x2d   :  { %403 = vmatmul.f32.vlgmr.msra.gmra.mxu3 %v278_v17  ;;  %381 = vmatmul.f32.vlgmr.msra.gmra.mxu2 %v278_v17 }
  0x31   :  { %333 = vmatmul.f32.vlgmr.msra.gmra.mxu0 %v279_v23 }
  0x33   :  { %357 = vmatmul.f32.vlgmr.msra.gmra.mxu1 %v280_v29 }
  0x9e   :  { %v110_v38 = vpop.f32.mrf.mxu0 }
  0xa0   :  { %v200_v39 = vpop.f32.mrf.mxu3  ;;  %v146_v40 = vpop.f32.mrf.mxu1 }
  0xa1   :  { %v174_v41 = vpop.f32.mrf.mxu2  ;;  %v147_v42 = vadd.f32 %v146_v40, %v110_v38 }
  0xa3   :  { %v175_v43 = vadd.f32 %v174_v41, %v147_v42 }
  0xa5   :  { %v201_v44 = vadd.f32 %v200_v39, %v175_v43 }
  0xa6   :  { %v230_v45 = vpop.f32.mrf.mxu0 }
  0xa7   :  { %v231_v46 = vadd.f32 %v230_v45, %v201_v44 }
  0xa8   :  { %v310_v47 = vpop.f32.mrf.mxu3  ;;  %v254_v48 = vpop.f32.mrf.mxu1 }
  0xa9   :  { %v284_v49 = vpop.f32.mrf.mxu2  ;;  %v255_v50 = vadd.f32 %v254_v48, %v231_v46 }
  0xab   :  { %v285_v51 = vadd.f32 %v284_v49, %v255_v50 }
  0xad   :  { %v311_v52 = vadd.f32 %v310_v47, %v285_v51 }
  0xae   :  { %v334_v53 = vpop.f32.mrf.mxu0 }
  0xaf   :  { %v335_v54 = vadd.f32 %v334_v53, %v311_v52 }
  0xb0   :  { %v358_v55 = vpop.f32.mrf.mxu1  ;;  %v404_v58 = vpop.f32.mrf.mxu3 }
  0xb1   :  { %v382_v56 = vpop.f32.mrf.mxu2  ;;  %v359_v57 = vadd.f32 %v358_v55, %v335_v54 }
  0xb3   :  { %v383_v59 = vadd.f32 %v382_v56, %v359_v57 }
  0xb5   :  { %v405_v60 = vadd.f32 %v404_v58, %v383_v59 }
  0xb7   :  { %407 = vst [vmem:[#allocation10] sm:$0xff] %v405_v60 }
  0xb8   :  { %418 = dma.vmem_to_hbm [thread:$0]  %s414_s3, 128, %s416_s11, [#allocation4]  }
  0xb9   :  { %560 = dma.done.wait [#allocation4], 128  }
  0xba   :  { %561 = vsyncadd [#allocation4], 4294967168 }
  0xbb   :  { %423 = vsyncpa [#allocation3], 1 }
  0xbc   :  { %424 = vsyncpa [#allocation6], 1 }
  0xbd   :  { %425 = vsyncpa [#allocation9], 1 }
  0xbe   :  { %426 = vsyncpa [#allocation4], 1 }

</bundles_post_ra>
